<compile_context>
chip_gen: v6e
topology: v6e:2x2x1
jax: 0.10.0
libtpu: 0.0.40
codegen_flags: <defaults>
</compile_context>

<pallas_src>
import jax
import jax.numpy as jnp
from jax.experimental import pallas as pl
from jax.experimental.pallas import tpu as pltpu

NPAD = 128  # classifier lane padding (requires num_classes <= 128)


def gradcam_fused_kernel(p2_ref, w_ref, fcw_ref, fcb_ref, o_ref, flat_ref):
    """conv3x3(pad=1)+bias+ReLU -> maxpool2x2 -> linear, one batch block.

    p2_ref   : (Kpad, 4*Bt*HWp) bf16  window-grouped patches (+ ones bias row),
                                      columns ordered (q = pool offset, b, hw)
    w_ref    : (Cout, Kpad)     bf16  conv weight (+ bias column)
    fcw_ref  : (Cout*HWp, 128)  bf16  fc_w.T, class dim zero-padded to 128
    fcb_ref  : (1, 128)         f32   fc bias, padded
    o_ref    : (Bt, 128)        f32   padded logits for this batch block
    flat_ref : (Bt, Cout*HWp)   f32   VMEM scratch: pooled maps in flatten order
    """
    bt = o_ref.shape[0]
    cout = w_ref.shape[0]
    hwp = p2_ref.shape[-1] // (4 * bt)
    lanes = bt * hwp                                    # columns per pool offset

    # Conv + folded bias + ReLU for all 4 pool offsets and Bt images at once:
    # one (Cout, Kpad) @ (Kpad, 4*Bt*HWp) MXU matmul, f32 accumulation.
    conv = jnp.dot(w_ref[...], p2_ref[...], preferred_element_type=jnp.float32)
    conv = jnp.maximum(conv, 0.0)                       # (Cout, 4*Bt*HWp)

    # 2x2 max-pool == elementwise max over the four pool-offset lane slabs.
    # Slab boundaries are Bt*HWp-aligned (a 128-multiple when Bt*HWp is), so
    # this is pure VPU work: no scratch, no strided reads, no relayout.
    pooled = jnp.maximum(
        jnp.maximum(conv[:, 0 * lanes:1 * lanes], conv[:, 1 * lanes:2 * lanes]),
        jnp.maximum(conv[:, 2 * lanes:3 * lanes], conv[:, 3 * lanes:4 * lanes]))

    # Re-lay pooled (Cout, Bt*HWp) into torch.flatten order (Bt, Cout*HWp) with
    # Bt*Cout static (1, HWp) copies through VMEM scratch so the classifier is
    # a single K = Cout*HWp contraction instead of Cout serial M=1 dots.
    for b in range(bt):
        for c in range(cout):
            flat_ref[b:b + 1, c * hwp:(c + 1) * hwp] = \
                pooled[c:c + 1, b * hwp:(b + 1) * hwp]

    # Fused classifier: one (Bt, 512) @ (512, 128) matmul + bias, dense store.
    flat = flat_ref[...].astype(jnp.bfloat16)
    logits = jnp.dot(flat, fcw_ref[...], preferred_element_type=jnp.float32)
    o_ref[...] = logits + fcb_ref[...]


def _pick_batch_block(batch, hwp, max_lanes=512):
    """Largest divisor of `batch` with Bt*HWp <= max_lanes (lane-dense tiles)."""
    cap = max(1, max_lanes // max(1, hwp))
    for bt in range(min(batch, cap), 0, -1):
        if batch % bt == 0:
            return bt
    return 1


def gradcam_forward(x_nchw, conv_w, conv_b, fc_w, fc_b):
    B, Cin, H, W = x_nchw.shape
    Cout, _, KH, KW = conv_w.shape
    num_classes = fc_w.shape[0]
    assert H % 2 == 0 and W % 2 == 0, "2x2 max-pool path assumes even H, W"
    assert num_classes <= NPAD, "num_classes must fit the 128-lane padding"
    Hp, Wp = H // 2, W // 2
    HWp = Hp * Wp

    Bt = _pick_batch_block(B, HWp)        # images per grid step (2 for the demo)
    nB = B // Bt
    cols = 4 * Bt * HWp                   # 512 lanes per step for the demo

    K = KH * KW * Cin                     # 36
    Kpad = ((K + 1 + 7) // 8) * 8         # +1 ones row for the bias, round to 8

    f32, bf16 = jnp.float32, jnp.bfloat16
    x_pad = jnp.pad(x_nchw.astype(f32), ((0, 0), (0, 0), (1, 1), (1, 1)))

    # Window-grouped im2col (tiny XLA slicing; emitted in bf16):
    #   row = (kh*KW + kw)*Cin + ci
    #   col = q*(Bt*HWp) + b_in*HWp + hp*Wp + wp,   q = dh*2 + dw
    #   val = x_pad[b, ci, 2*hp + dh + kh, 2*wp + dw + kw]
    slabs = []
    for dh in range(2):
        for dw in range(2):
            for kh in range(KH):
                for kw in range(KW):
                    slabs.append(
                        x_pad[:, :, dh + kh:dh + kh + H:2, dw + kw:dw + kw + W:2])
    stk = jnp.stack(slabs, axis=0)                         # (4*KH*KW, B, Cin, Hp, Wp)
    stk = stk.reshape(4, KH * KW, nB, Bt, Cin, HWp)
    p2 = jnp.transpose(stk, (2, 1, 4, 0, 3, 5)).reshape(nB, K, cols)
    p2 = jnp.concatenate([p2, jnp.ones((nB, 1, cols), f32)], axis=1)   # bias row
    p2 = jnp.pad(p2, ((0, 0), (0, Kpad - K - 1), (0, 0))).astype(bf16)

    # Conv weight (Cout, KH*KW*Cin) + bias column, padded to Kpad.
    w_mat = jnp.transpose(conv_w.astype(f32), (0, 2, 3, 1)).reshape(Cout, K)
    w_aug = jnp.concatenate([w_mat, conv_b.astype(f32)[:, None]], axis=1)
    w_aug = jnp.pad(w_aug, ((0, 0), (0, Kpad - K - 1))).astype(bf16)

    # Classifier weights: fc_w.T rows are already in torch.flatten (c, hp, wp)
    # order; pad the class dim to 128 lanes for dense stores.
    fcw = jnp.pad(fc_w.T.astype(f32),
                  ((0, 0), (0, NPAD - num_classes))).astype(bf16)      # (512, 128)
    fcb = jnp.pad(fc_b.astype(f32).reshape(1, num_classes),
                  ((0, 0), (0, NPAD - num_classes)))                   # (1, 128)

    out = pl.pallas_call(
        gradcam_fused_kernel,
        out_shape=jax.ShapeDtypeStruct((nB, Bt, NPAD), f32),
        grid_spec=pltpu.PrefetchScalarGridSpec(
            num_scalar_prefetch=0,
            grid=(nB,),
            in_specs=[
                pl.BlockSpec((None, Kpad, cols), lambda i: (i, 0, 0)),
                pl.BlockSpec((Cout, Kpad), lambda i: (0, 0)),
                pl.BlockSpec((Cout * HWp, NPAD), lambda i: (0, 0)),
                pl.BlockSpec((1, NPAD), lambda i: (0, 0)),
            ],
            out_specs=pl.BlockSpec((None, Bt, NPAD), lambda i: (i, 0, 0)),
            scratch_shapes=[pltpu.VMEM((Bt, Cout * HWp), f32)],
        ),
        compiler_params=pltpu.CompilerParams(dimension_semantics=("parallel",)),
    )(p2, w_aug, fcw, fcb)

    return out.reshape(B, NPAD)[:, :num_classes]


def reference_forward(x_nchw, conv_w, conv_b, fc_w, fc_b):
    """Pure-JAX f32 reference matching the PyTorch forward semantics."""
    y = jax.lax.conv_general_dilated(
        x_nchw, conv_w, window_strides=(1, 1), padding=((1, 1), (1, 1)),
        dimension_numbers=("NCHW", "OIHW", "NCHW"),
        precision=jax.lax.Precision.HIGHEST)
    y = jnp.maximum(y + conv_b[None, :, None, None], 0.0)
    y = jax.lax.reduce_window(y, -jnp.inf, jax.lax.max,
                              (1, 1, 2, 2), (1, 1, 2, 2), "VALID")
    flat = y.reshape(y.shape[0], -1)
    return flat @ fc_w.T + fc_b


if __name__ == "__main__":
    key = jax.random.PRNGKey(0)
    k1, k2, k3, k4, k5 = jax.random.split(key, 5)

    B, Cin, H, W = 2, 4, 16, 16
    Cout, num_classes = 8, 10

    x = jax.random.normal(k1, (B, Cin, H, W), jnp.float32)
    conv_w = jax.random.normal(k2, (Cout, Cin, 3, 3), jnp.float32) * 0.1
    conv_b = jax.random.normal(k3, (Cout,), jnp.float32) * 0.1
    fc_w = jax.random.normal(
        k4, (num_classes, Cout * (H // 2) * (W // 2)), jnp.float32) * 0.05
    fc_b = jax.random.normal(k5, (num_classes,), jnp.float32) * 0.05

    out = jax.jit(gradcam_forward)(x, conv_w, conv_b, fc_w, fc_b)
    out = jax.block_until_ready(out)

    ref = reference_forward(x, conv_w, conv_b, fc_w, fc_b)
    assert out.shape == (B, num_classes)
    # bf16 MXU operands (per perf review) -> validate at a bf16-appropriate tol.
    assert jnp.allclose(out, ref, atol=2e-2, rtol=2e-2), (out, ref)
    print("KERNEL_OK")
</pallas_src>

<mosaic_0001>
module attributes {stable_mosaic.version = 11 : i64} {
  func.func @gradcam_fused_kernel(%arg0: i32, %arg1: memref<1x40x512xbf16, #tpu.memory_space<vmem>>, %arg2: memref<8x40xbf16, #tpu.memory_space<vmem>>, %arg3: memref<512x128xbf16, #tpu.memory_space<vmem>>, %arg4: memref<1x128xf32, #tpu.memory_space<vmem>>, %arg5: memref<1x2x128xf32, #tpu.memory_space<vmem>>, %arg6: memref<2x512xf32, #tpu.memory_space<vmem>>) attributes {dimension_semantics = [#tpu.dimension_semantics<parallel>], iteration_bounds = array<i64: 1>, scalar_prefetch = 0 : i64, scratch_operands = 1 : i64, tpu.core_type = #tpu.core_type<tc>, window_params = [{transform_indices = @transform_0, window_bounds = array<i64: 1, 40, 512>}, {pipeline_mode = #tpu.pipeline_mode<synchronous>, transform_indices = @transform_1, window_bounds = array<i64: 8, 40>}, {pipeline_mode = #tpu.pipeline_mode<synchronous>, transform_indices = @transform_2, window_bounds = array<i64: 512, 128>}, {pipeline_mode = #tpu.pipeline_mode<synchronous>, transform_indices = @transform_3, window_bounds = array<i64: 1, 128>}, {transform_indices = @transform_4, window_bounds = array<i64: 1, 2, 128>}]} {
    %c0 = arith.constant 0 : index
    %c0_0 = arith.constant 0 : index
    %0 = vector.load %arg2[%c0, %c0_0] : memref<8x40xbf16, #tpu.memory_space<vmem>>, vector<8x40xbf16>
    %c0_1 = arith.constant 0 : index
    %c0_2 = arith.constant 0 : index
    %c0_3 = arith.constant 0 : index
    %1 = vector.load %arg1[%c0_1, %c0_2, %c0_3] : memref<1x40x512xbf16, #tpu.memory_space<vmem>>, vector<1x40x512xbf16>
    %2 = vector.shape_cast %1 : vector<1x40x512xbf16> to vector<40x512xbf16>
    %cst = arith.constant dense<0.000000e+00> : vector<8x512xf32>
    %3 = tpu.matmul %0, %2, %cst {dimension_numbers = #tpu.dot_dimension_numbers<[1], [0], [0], [1], [0, 0, 1, 1], [], []>} : vector<8x40xbf16>, vector<40x512xbf16>, vector<8x512xf32> -> vector<8x512xf32>
    %cst_4 = arith.constant 0.000000e+00 : f32
    %4 = vector.broadcast %cst_4 : f32 to vector<8x512xf32>
    %5 = arith.maximumf %3, %4 : vector<8x512xf32>
    %6 = vector.extract_strided_slice %5 {offsets = [0, 0], sizes = [8, 128], strides = [1, 1]} : vector<8x512xf32> to vector<8x128xf32>
    %7 = vector.extract_strided_slice %5 {offsets = [0, 128], sizes = [8, 128], strides = [1, 1]} : vector<8x512xf32> to vector<8x128xf32>
    %8 = arith.maximumf %6, %7 : vector<8x128xf32>
    %9 = vector.extract_strided_slice %5 {offsets = [0, 256], sizes = [8, 128], strides = [1, 1]} : vector<8x512xf32> to vector<8x128xf32>
    %10 = vector.extract_strided_slice %5 {offsets = [0, 384], sizes = [8, 128], strides = [1, 1]} : vector<8x512xf32> to vector<8x128xf32>
    %11 = arith.maximumf %9, %10 : vector<8x128xf32>
    %12 = arith.maximumf %8, %11 : vector<8x128xf32>
    %13 = vector.extract_strided_slice %12 {offsets = [0, 0], sizes = [1, 64], strides = [1, 1]} : vector<8x128xf32> to vector<1x64xf32>
    %c0_5 = arith.constant 0 : index
    %c0_6 = arith.constant 0 : index
    %14 = vector.load %arg6[%c0_5, %c0_6] : memref<2x512xf32, #tpu.memory_space<vmem>>, vector<1x64xf32>
    tpu.vector_store %arg6[%c0_5, %c0_6], %13 {strides = array<i32>} : memref<2x512xf32, #tpu.memory_space<vmem>>, vector<1x64xf32>,
    %15 = vector.extract_strided_slice %12 {offsets = [1, 0], sizes = [1, 64], strides = [1, 1]} : vector<8x128xf32> to vector<1x64xf32>
    %c0_7 = arith.constant 0 : index
    %c64 = arith.constant 64 : index
    %16 = vector.load %arg6[%c0_7, %c64] : memref<2x512xf32, #tpu.memory_space<vmem>>, vector<1x64xf32>
    tpu.vector_store %arg6[%c0_7, %c64], %15 {strides = array<i32>} : memref<2x512xf32, #tpu.memory_space<vmem>>, vector<1x64xf32>,
    %17 = vector.extract_strided_slice %12 {offsets = [2, 0], sizes = [1, 64], strides = [1, 1]} : vector<8x128xf32> to vector<1x64xf32>
    %c0_8 = arith.constant 0 : index
    %c128 = arith.constant 128 : index
    %18 = vector.load %arg6[%c0_8, %c128] : memref<2x512xf32, #tpu.memory_space<vmem>>, vector<1x64xf32>
    tpu.vector_store %arg6[%c0_8, %c128], %17 {strides = array<i32>} : memref<2x512xf32, #tpu.memory_space<vmem>>, vector<1x64xf32>,
    %19 = vector.extract_strided_slice %12 {offsets = [3, 0], sizes = [1, 64], strides = [1, 1]} : vector<8x128xf32> to vector<1x64xf32>
    %c0_9 = arith.constant 0 : index
    %c192 = arith.constant 192 : index
    %20 = vector.load %arg6[%c0_9, %c192] : memref<2x512xf32, #tpu.memory_space<vmem>>, vector<1x64xf32>
    tpu.vector_store %arg6[%c0_9, %c192], %19 {strides = array<i32>} : memref<2x512xf32, #tpu.memory_space<vmem>>, vector<1x64xf32>,
    %21 = vector.extract_strided_slice %12 {offsets = [4, 0], sizes = [1, 64], strides = [1, 1]} : vector<8x128xf32> to vector<1x64xf32>
    %c0_10 = arith.constant 0 : index
    %c256 = arith.constant 256 : index
    %22 = vector.load %arg6[%c0_10, %c256] : memref<2x512xf32, #tpu.memory_space<vmem>>, vector<1x64xf32>
    tpu.vector_store %arg6[%c0_10, %c256], %21 {strides = array<i32>} : memref<2x512xf32, #tpu.memory_space<vmem>>, vector<1x64xf32>,
    %23 = vector.extract_strided_slice %12 {offsets = [5, 0], sizes = [1, 64], strides = [1, 1]} : vector<8x128xf32> to vector<1x64xf32>
    %c0_11 = arith.constant 0 : index
    %c320 = arith.constant 320 : index
    %24 = vector.load %arg6[%c0_11, %c320] : memref<2x512xf32, #tpu.memory_space<vmem>>, vector<1x64xf32>
    tpu.vector_store %arg6[%c0_11, %c320], %23 {strides = array<i32>} : memref<2x512xf32, #tpu.memory_space<vmem>>, vector<1x64xf32>,
    %25 = vector.extract_strided_slice %12 {offsets = [6, 0], sizes = [1, 64], strides = [1, 1]} : vector<8x128xf32> to vector<1x64xf32>
    %c0_12 = arith.constant 0 : index
    %c384 = arith.constant 384 : index
    %26 = vector.load %arg6[%c0_12, %c384] : memref<2x512xf32, #tpu.memory_space<vmem>>, vector<1x64xf32>
    tpu.vector_store %arg6[%c0_12, %c384], %25 {strides = array<i32>} : memref<2x512xf32, #tpu.memory_space<vmem>>, vector<1x64xf32>,
    %27 = vector.extract_strided_slice %12 {offsets = [7, 0], sizes = [1, 64], strides = [1, 1]} : vector<8x128xf32> to vector<1x64xf32>
    %c0_13 = arith.constant 0 : index
    %c448 = arith.constant 448 : index
    %28 = vector.load %arg6[%c0_13, %c448] : memref<2x512xf32, #tpu.memory_space<vmem>>, vector<1x64xf32>
    tpu.vector_store %arg6[%c0_13, %c448], %27 {strides = array<i32>} : memref<2x512xf32, #tpu.memory_space<vmem>>, vector<1x64xf32>,
    %29 = vector.extract_strided_slice %12 {offsets = [0, 64], sizes = [1, 64], strides = [1, 1]} : vector<8x128xf32> to vector<1x64xf32>
    %c1 = arith.constant 1 : index
    %c0_14 = arith.constant 0 : index
    %30 = vector.load %arg6[%c1, %c0_14] : memref<2x512xf32, #tpu.memory_space<vmem>>, vector<1x64xf32>
    tpu.vector_store %arg6[%c1, %c0_14], %29 {strides = array<i32>} : memref<2x512xf32, #tpu.memory_space<vmem>>, vector<1x64xf32>,
    %31 = vector.extract_strided_slice %12 {offsets = [1, 64], sizes = [1, 64], strides = [1, 1]} : vector<8x128xf32> to vector<1x64xf32>
    %c1_15 = arith.constant 1 : index
    %c64_16 = arith.constant 64 : index
    %32 = vector.load %arg6[%c1_15, %c64_16] : memref<2x512xf32, #tpu.memory_space<vmem>>, vector<1x64xf32>
    tpu.vector_store %arg6[%c1_15, %c64_16], %31 {strides = array<i32>} : memref<2x512xf32, #tpu.memory_space<vmem>>, vector<1x64xf32>,
    %33 = vector.extract_strided_slice %12 {offsets = [2, 64], sizes = [1, 64], strides = [1, 1]} : vector<8x128xf32> to vector<1x64xf32>
    %c1_17 = arith.constant 1 : index
    %c128_18 = arith.constant 128 : index
    %34 = vector.load %arg6[%c1_17, %c128_18] : memref<2x512xf32, #tpu.memory_space<vmem>>, vector<1x64xf32>
    tpu.vector_store %arg6[%c1_17, %c128_18], %33 {strides = array<i32>} : memref<2x512xf32, #tpu.memory_space<vmem>>, vector<1x64xf32>,
    %35 = vector.extract_strided_slice %12 {offsets = [3, 64], sizes = [1, 64], strides = [1, 1]} : vector<8x128xf32> to vector<1x64xf32>
    %c1_19 = arith.constant 1 : index
    %c192_20 = arith.constant 192 : index
    %36 = vector.load %arg6[%c1_19, %c192_20] : memref<2x512xf32, #tpu.memory_space<vmem>>, vector<1x64xf32>
    tpu.vector_store %arg6[%c1_19, %c192_20], %35 {strides = array<i32>} : memref<2x512xf32, #tpu.memory_space<vmem>>, vector<1x64xf32>,
    %37 = vector.extract_strided_slice %12 {offsets = [4, 64], sizes = [1, 64], strides = [1, 1]} : vector<8x128xf32> to vector<1x64xf32>
    %c1_21 = arith.constant 1 : index
    %c256_22 = arith.constant 256 : index
    %38 = vector.load %arg6[%c1_21, %c256_22] : memref<2x512xf32, #tpu.memory_space<vmem>>, vector<1x64xf32>
    tpu.vector_store %arg6[%c1_21, %c256_22], %37 {strides = array<i32>} : memref<2x512xf32, #tpu.memory_space<vmem>>, vector<1x64xf32>,
    %39 = vector.extract_strided_slice %12 {offsets = [5, 64], sizes = [1, 64], strides = [1, 1]} : vector<8x128xf32> to vector<1x64xf32>
    %c1_23 = arith.constant 1 : index
    %c320_24 = arith.constant 320 : index
    %40 = vector.load %arg6[%c1_23, %c320_24] : memref<2x512xf32, #tpu.memory_space<vmem>>, vector<1x64xf32>
    tpu.vector_store %arg6[%c1_23, %c320_24], %39 {strides = array<i32>} : memref<2x512xf32, #tpu.memory_space<vmem>>, vector<1x64xf32>,
    %41 = vector.extract_strided_slice %12 {offsets = [6, 64], sizes = [1, 64], strides = [1, 1]} : vector<8x128xf32> to vector<1x64xf32>
    %c1_25 = arith.constant 1 : index
    %c384_26 = arith.constant 384 : index
    %42 = vector.load %arg6[%c1_25, %c384_26] : memref<2x512xf32, #tpu.memory_space<vmem>>, vector<1x64xf32>
    tpu.vector_store %arg6[%c1_25, %c384_26], %41 {strides = array<i32>} : memref<2x512xf32, #tpu.memory_space<vmem>>, vector<1x64xf32>,
    %43 = vector.extract_strided_slice %12 {offsets = [7, 64], sizes = [1, 64], strides = [1, 1]} : vector<8x128xf32> to vector<1x64xf32>
    %c1_27 = arith.constant 1 : index
    %c448_28 = arith.constant 448 : index
    %44 = vector.load %arg6[%c1_27, %c448_28] : memref<2x512xf32, #tpu.memory_space<vmem>>, vector<1x64xf32>
    tpu.vector_store %arg6[%c1_27, %c448_28], %43 {strides = array<i32>} : memref<2x512xf32, #tpu.memory_space<vmem>>, vector<1x64xf32>,
    %c0_29 = arith.constant 0 : index
    %c0_30 = arith.constant 0 : index
    %45 = vector.load %arg6[%c0_29, %c0_30] : memref<2x512xf32, #tpu.memory_space<vmem>>, vector<2x512xf32>
    %46 = arith.truncf %45 : vector<2x512xf32> to vector<2x512xbf16>
    %c0_31 = arith.constant 0 : index
    %c0_32 = arith.constant 0 : index
    %47 = vector.load %arg3[%c0_31, %c0_32] : memref<512x128xbf16, #tpu.memory_space<vmem>>, vector<512x128xbf16>
    %cst_33 = arith.constant dense<0.000000e+00> : vector<2x128xf32>
    %48 = tpu.matmul %46, %47, %cst_33 {dimension_numbers = #tpu.dot_dimension_numbers<[1], [0], [0], [1], [0, 0, 1, 1], [], []>} : vector<2x512xbf16>, vector<512x128xbf16>, vector<2x128xf32> -> vector<2x128xf32>
    %c0_34 = arith.constant 0 : index
    %c0_35 = arith.constant 0 : index
    %49 = vector.load %arg4[%c0_34, %c0_35] : memref<1x128xf32, #tpu.memory_space<vmem>>, vector<1x128xf32>
    %50 = vector.broadcast %49 : vector<1x128xf32> to vector<2x128xf32>
    %51 = arith.addf %48, %50 : vector<2x128xf32>
    %c0_36 = arith.constant 0 : index
    %c0_37 = arith.constant 0 : index
    %c0_38 = arith.constant 0 : index
    %52 = vector.load %arg5[%c0_36, %c0_37, %c0_38] : memref<1x2x128xf32, #tpu.memory_space<vmem>>, vector<1x2x128xf32>
    %53 = vector.shape_cast %52 : vector<1x2x128xf32> to vector<2x128xf32>
    %54 = vector.shape_cast %51 : vector<2x128xf32> to vector<1x2x128xf32>
    tpu.vector_store %arg5[%c0_36, %c0_37, %c0_38], %54 {strides = array<i32>} : memref<1x2x128xf32, #tpu.memory_space<vmem>>, vector<1x2x128xf32>,
    return
  }
  func.func @transform_0(%arg0: i32) -> (i32, i32, i32) {
    %c0_i32 = arith.constant 0 : i32
    %c0_i32_0 = arith.constant 0 : i32
    %c0_i32_1 = arith.constant 0 : i32
    return %arg0, %c0_i32, %c0_i32_0 : i32, i32, i32
  }
  func.func @transform_1(%arg0: i32) -> (i32, i32) {
    %c0_i32 = arith.constant 0 : i32
    %c0_i32_0 = arith.constant 0 : i32
    %c0_i32_1 = arith.constant 0 : i32
    return %c0_i32, %c0_i32_0 : i32, i32
  }
  func.func @transform_2(%arg0: i32) -> (i32, i32) {
    %c0_i32 = arith.constant 0 : i32
    %c0_i32_0 = arith.constant 0 : i32
    %c0_i32_1 = arith.constant 0 : i32
    return %c0_i32, %c0_i32_0 : i32, i32
  }
  func.func @transform_3(%arg0: i32) -> (i32, i32) {
    %c0_i32 = arith.constant 0 : i32
    %c0_i32_0 = arith.constant 0 : i32
    %c0_i32_1 = arith.constant 0 : i32
    return %c0_i32, %c0_i32_0 : i32, i32
  }
  func.func @transform_4(%arg0: i32) -> (i32, i32, i32) {
    %c0_i32 = arith.constant 0 : i32
    %c0_i32_0 = arith.constant 0 : i32
    %c0_i32_1 = arith.constant 0 : i32
    return %arg0, %c0_i32, %c0_i32_0 : i32, i32, i32
  }
}

</mosaic_0001>

<bundles_post_ra>
// kernel: gradcam_forward.1
= control target key start
LH: loop header
LB: loop body
LE: loop exit
PB: predicated region body
PF: predicated region fallthrough
CT: control target
= control target key end

     0   :  { %vm84_vm0 = vcmask 1043456   ;;  %v814_v7 = vmov 0   ;;  %vm80_vm1 = vcmask 326656   ;;  %s1008_s0 = inlined_call_operand.vmem [shape: bf16[1,40,512], index: 0, kind: input, shape index: {}]   ;;  %s1009_s1 = inlined_call_operand.vmem [shape: bf16[8,40], index: 1, kind: input, shape index: {}]   ;;  %s1010_s2 = inlined_call_operand.vmem [shape: bf16[512,128], index: 2, kind: input, shape index: {}]   ;;  %s1011_s3 = inlined_call_operand.vmem [shape: f32[1,128], index: 3, kind: input, shape index: {}]   ;;  %s1012_s4 = inlined_call_operand.hbm [shape: f32[1,2,128], index: 4, kind: output, shape index: {}]  }
   0x1   :  { %v28_v0 = vld [vmem:[%s1008_s0 + $0x40] sm:$0xff]  ;;  %v29_v1 = vld [vmem:[%s1008_s0 + $0x48] sm:$0xff]  ;;  %129 = vmatprep.mubr.bf16.mxu0 %v814_v7  ;;  %170 = vmatprep.mubr.bf16.mxu1 %v814_v7 }
   0x2   :  { %v655_v2 = vcombine.high %v28_v0, %v28_v0  ;;  %v657_v3 = vcombine.high %v29_v1, %v29_v1  ;;  %v654_v4 = vcombine.low %v28_v0, %v28_v0  ;;  %v656_v5 = vcombine.low %v29_v1, %v29_v1  ;;  %v747_v6 = vld [vmem:[%s1008_s0 + $0x24] ss:$16 sps:$4 sm:$0xff]   ;;  %v749_v8 = vld [vmem:[%s1008_s0 + $0x2c] ss:$16 sps:$4 sm:$0xff]   ;;  %v751_v11 = vld [vmem:[%s1008_s0 + $0x20] ss:$16 sps:$4 sm:$0xff]  }
   0x3   :  { %v752_v12 = vld [vmem:[%s1008_s0 + $0x28] ss:$16 sps:$4 sm:$0xff]   ;;  %v753_v13 = vld [vmem:[%s1008_s0 + $0x4] ss:$16 sps:$4 sm:$0xff]   ;;  %v755_v14 = vld [vmem:[%s1008_s0 + $0xc] ss:$16 sps:$4 sm:$0xff]  }
   0x4   :  { %658 = vmatprep.subr.msk.bf16.mxu0 %vm84_vm0, %v655_v2  ;;  %660 = vmatprep.subr.msk.bf16.mxu1 %vm84_vm0, %v657_v3  ;;  %v86_v9 = vsel %vm84_vm0, %v654_v4, 0  ;;  %v92_v10 = vsel %vm84_vm0, %v656_v5, 0  ;;  %v757_v15 = vld [vmem:[%s1008_s0] ss:$16 sps:$4 sm:$0xff]   ;;  %v758_v16 = vld [vmem:[%s1008_s0 + $0x8] ss:$16 sps:$4 sm:$0xff]  }
   0x5   :  { %108 = vmatpush1.bf16.msra.mxu0 %v86_v9  ;;  %149 = vmatpush1.bf16.msra.mxu1 %v92_v10  ;;  %v19_v17 = vld [vmem:[%s1009_s1] sm:$0xf] }
   0x6   :  { %109 = vmatprep.subr.bf16.mxu0 %v747_v6  ;;  %150 = vmatprep.subr.bf16.mxu1 %v749_v8 }
   0x9   :  { %110 = vmatpush1.bf16.msra.mxu0 %v751_v11  ;;  %151 = vmatpush1.bf16.msra.mxu1 %v752_v12 }
   0xa   :  { %111 = vmatprep.subr.bf16.mxu0 %v753_v13  ;;  %152 = vmatprep.subr.bf16.mxu1 %v755_v14 }
   0xd   :  { %112 = vmatpush1.bf16.msra.mxu0 %v757_v15  ;;  %153 = vmatpush1.bf16.msra.mxu1 %v758_v16 }
  0x10   :  { %659 = vmatmul.mubr.msk.bf16.vlgmr.msra.gmra.mxu0 %vm80_vm1, %v19_v17  ;;  %661 = vmatmul.mubr.msk.bf16.vlgmr.msra.gmra.mxu1 %vm80_vm1, %v19_v17 }
  0x11   :  { %9 = vsyncpa [#allocation4], 0  ;;  %v759_v18 = vld [vmem:[%s1010_s2 + $0x78] sm:$0xff]   ;;  %v815_v22 = vmov 1983009808   ;;  %v192_v24 = vlaneseq  ;;  %v763_v25 = vld [vmem:[%s1010_s2 + $0x70] sm:$0xff]  }
  0x12   :  { %v760_v19 = vld [vmem:[%s1010_s2 + $0x38] sm:$0xff]   ;;  %695 = vmatprep.subr.bf16.mxu0 %v759_v18  ;;  %v190_v23 = vunpack.c.l.s4 %v815_v22  ;;  %v764_v26 = vld [vmem:[%s1010_s2 + $0x30] sm:$0xff]   ;;  %v767_v33 = vld [vmem:[%s1010_s2 + $0x68] sm:$0xff]   ;;  %vm186_vm2 = vcmask 516096   ;;  %s816_s17 = smov 64   ;;  %vm201_vm3 = vcmask 1040896  }
  0x13   :  { %v761_v20 = vld [vmem:[%s1010_s2 + $0xf8] sm:$0xff]   ;;  %696 = vmatpush3.bf16.msra.mxu0 %v760_v19  ;;  %v765_v27 = vld [vmem:[%s1010_s2 + $0xf0] sm:$0xff]   ;;  %v193_v32 = vshrl.u32 %v192_v24, 7  ;;  %v768_v36 = vld [vmem:[%s1010_s2 + $0x28] sm:$0xff]   ;;  %s817_s19 = smov [#allocation3]  }
  0x14   :  { %717 = vmatprep.subr.bf16.mxu1 %v761_v20  ;;  %v762_v21 = vld [vmem:[%s1010_s2 + $0xb8] sm:$0xff]   ;;  %697 = vmatprep.subr.bf16.mxu0 %v763_v25  ;;  %v766_v30 = vld [vmem:[%s1010_s2 + $0xb0] sm:$0xff]   ;;  %v191_v31 = vunpack.c.0.s8 %v190_v23  ;;  %v769_v41 = vld [vmem:[%s1010_s2 + $0xe8] sm:$0xff]   ;;  %s638_s20 = sshll.u32 %s817_s19, 4  ;;  %s639_s20 = int_to_ptr.vmem [resolvable:$true] %s638_s20 }
  0x15   :  { %718 = vmatpush3.bf16.msra.mxu1 %v762_v21  ;;  %v770_v44 = vld [vmem:[%s1010_s2 + $0xa8] sm:$0xff]   ;;  %v771_v48 = vld [vmem:[%s1010_s2 + $0x60] sm:$0xff]   ;;  %v775_v57 = vld [vmem:[%s1010_s2 + $0x58] sm:$0xff]   ;;  %s792_s21 = scalar_lea.vmem %s639_s20, 32  ;;  %p797_p1 = scmp.lt.s32.totalorder %s639_s20, %s639_s20 }
  0x16   :  { %719 = vmatprep.subr.bf16.mxu1 %v765_v27  ;;  %v912_v47 = vsub.s32 %v191_v31, %v193_v32  ;;  %v772_v51 = vld [vmem:[%s1010_s2 + $0x20] sm:$0xff]   ;;  %v776_v58 = vld [vmem:[%s1010_s2 + $0x18] sm:$0xff]   ;;  %v779_v63 = vld [vmem:[%s1010_s2 + $0x50] sm:$0xff]   ;;  %p793_p0 = scmp.ne.s32.totalorder %s639_s20, %s792_s21  ;;  %p798_p2 = scmp.lt.s32.totalorder %s792_s21, %s792_s21 }
  0x17   :  { %698 = vmatpush3.bf16.msra.mxu0 %v764_v26  ;;  %v773_v53 = vld [vmem:[%s1010_s2 + $0xe0] sm:$0xff]   ;;  %v777_v61 = vld [vmem:[%s1010_s2 + $0xd8] sm:$0xff]   ;;  %v780_v0 = vld [vmem:[%s1010_s2 + $0x10] sm:$0xff]  }
  0x18   :  { %699 = vmatprep.subr.bf16.mxu0 %v767_v33  ;;  %v774_v54 = vld [vmem:[%s1010_s2 + $0xa0] sm:$0xff]   ;;  %v778_v62 = vld [vmem:[%s1010_s2 + $0x98] sm:$0xff]   ;;  %v781_v3 = vld [vmem:[%s1010_s2 + $0xd0] sm:$0xff]   ;;  %p799_p3 = por %p798_p2, %p797_p1 }
  0x19   :  { %720 = vmatpush3.bf16.msra.mxu1 %v766_v30  ;;  %v783_v4 = vld [vmem:[%s1010_s2 + $0x48] sm:$0xff]   ;;  %v782_v5 = vld [vmem:[%s1010_s2 + $0x90] sm:$0xff]   ;;  %v787_v11 = vld [vmem:[%s1010_s2 + $0x40] sm:$0xff]  }
  0x1a   :  { %721 = vmatprep.subr.bf16.mxu1 %v769_v41  ;;  %v785_v7 = vld [vmem:[%s1010_s2 + $0xc8] sm:$0xff]   ;;  %v789_v15 = vld [vmem:[%s1010_s2 + $0xc0] sm:$0xff]   ;;  %p800_p4 = pnand %p799_p3, %p793_p0 }
  0x1b   :  { %700 = vmatpush3.bf16.msra.mxu0 %v768_v36  ;;  %v784_v8 = vld [vmem:[%s1010_s2 + $0x8] sm:$0xff]   ;;  %v788_v16 = vld [vmem:[%s1010_s2] sm:$0xff]  }
  0x1c   :  { %701 = vmatprep.subr.bf16.mxu0 %v771_v48  ;;  %v786_v12 = vld [vmem:[%s1010_s2 + $0x88] sm:$0xff]   ;;  %v790_v19 = vld [vmem:[%s1010_s2 + $0x80] sm:$0xff]  }
  0x1d   :  { %722 = vmatpush3.bf16.msra.mxu1 %v770_v44 }
  0x1e   :  { %723 = vmatprep.subr.bf16.mxu1 %v773_v53 }
  0x1f   :  { %702 = vmatpush3.bf16.msra.mxu0 %v772_v51 }
  0x20   :  { %703 = vmatprep.subr.bf16.mxu0 %v775_v57 }
  0x21   :  { %724 = vmatpush3.bf16.msra.mxu1 %v774_v54 }
  0x22   :  { %725 = vmatprep.subr.bf16.mxu1 %v777_v61 }
  0x23   :  { %704 = vmatpush3.bf16.msra.mxu0 %v776_v58 }
  0x24   :  { %705 = vmatprep.subr.bf16.mxu0 %v779_v63 }
  0x25   :  { %726 = vmatpush3.bf16.msra.mxu1 %v778_v62 }
  0x26   :  { %727 = vmatprep.subr.bf16.mxu1 %v781_v3 }
  0x27   :  { %706 = vmatpush3.bf16.msra.mxu0 %v780_v0 }
  0x28   :  { %707 = vmatprep.subr.bf16.mxu0 %v783_v4 }
  0x29   :  { %728 = vmatpush3.bf16.msra.mxu1 %v782_v5 }
  0x2a   :  { %729 = vmatprep.subr.bf16.mxu1 %v785_v7 }
  0x2b   :  { %708 = vmatpush3.bf16.msra.mxu0 %v784_v8 }
  0x2c   :  { %709 = vmatprep.subr.bf16.mxu0 %v787_v11 }
  0x2d   :  { %730 = vmatpush3.bf16.msra.mxu1 %v786_v12 }
  0x2e   :  { %731 = vmatprep.subr.bf16.mxu1 %v789_v15 }
  0x2f   :  { %710 = vmatpush3.bf16.msra.mxu0 %v788_v16 }
  0x31   :  { %732 = vmatpush3.bf16.msra.mxu1 %v790_v19 }
  0xd0   :  { %v131_v28 = vpop.f32.mrf.mxu0  ;;  %v172_v29 = vpop.f32.mrf.mxu1 }
  0xd1   :  { %v179_v37 = vmax.f32 %v131_v28, 0.0  ;;  %v181_v38 = vmax.f32 %v172_v29, 0.0 }
  0xd2   :  { %v133_v34 = vpop.f32.mrf.mxu0  ;;  %v174_v35 = vpop.f32.mrf.mxu1 }
  0xd3   :  { %v180_v39 = vmax.f32 %v133_v34, 0.0  ;;  %v182_v40 = vmax.f32 %v174_v35, 0.0 }
  0xd4   :  { %v135_v42 = vpop.f32.mrf.mxu0  ;;  %v176_v43 = vpop.f32.mrf.mxu1 }
  0xd5   :  { %v183_v45 = vmax.f32 %v179_v37, %v180_v39  ;;  %v184_v46 = vmax.f32 %v181_v38, %v182_v40  ;;  %v662_v39 = vld [vmem:[%s1011_s3] ss:$0 sm:$0xff] }
  0xd6   :  { %v136_v49 = vpop.f32.mrf.mxu0  ;;  %v177_v50 = vpop.f32.mrf.mxu1 }
  0xd7   :  { %v185_v52 = vmax.f32 %v183_v45, %v184_v46 }
  0xd9   :  { %v212_v55 = vcombine.high %v185_v52, %v185_v52  ;;  %v195_v56 = vrot.slane %v185_v52, %v912_v47  ;;  %187 = vst.msk [vmem:[#allocation2] sm:$0x1] %vm186_vm2, %v185_v52 }
  0xdb   :  { %237 = vrot.lane.b32.xlu0 %v195_v56, %s816_s17  ;;  %v219_v59 = vrot.slane %v212_v55, %v912_v47  ;;  %v203_v60 = vcombine.high %v195_v56, %v195_v56  ;;  %v196_v2 = vrot.slane %v195_v56, 7 }
  0xdd   :  { %249 = vrot.lane.b32.xlu1 %v219_v59, %s816_s17  ;;  %v228_v1 = vcombine.high %v219_v59, %v219_v59  ;;  %205 = vst.msk [vmem:[#allocation2 + $0x2] sm:$0x1] %vm186_vm2, %v203_v60  ;;  %221 = vst.msk [vmem:[#allocation2 + $0x4] sm:$0x1] %vm186_vm2, %v219_v59  ;;  %v206_v6 = vrot.slane %v203_v60, 7  ;;  %v197_v9 = vrot.slane %v196_v2, 2 }
  0xde   :  { %v222_v10 = vrot.slane %v219_v59, 7 }
  0xdf   :  { %243 = vrot.lane.b32.xlu0 %v203_v60, %s816_s17  ;;  %230 = vst.msk [vmem:[#allocation2 + $0x6] sm:$0x1] %vm186_vm2, %v228_v1  ;;  %v207_v13 = vrot.slane %v206_v6, 2  ;;  %v231_v14 = vrot.slane %v228_v1, 7 }
  0xe0   :  { %v223_v17 = vrot.slane %v222_v10, 2 }
  0xe1   :  { %255 = vrot.lane.b32.xlu1 %v228_v1, %s816_s17  ;;  %v232_v18 = vrot.slane %v231_v14, 2 }
  0xe3   :  { %198 = vrot.lane.b32.xlu0 %v197_v9, %s816_s17 }
  0xe5   :  { %208 = vrot.lane.b32.xlu1 %v207_v13, %s816_s17 }
  0xe7   :  { %224 = vrot.lane.b32.xlu0 %v223_v17, %s816_s17 }
  0xe9   :  { %233 = vrot.lane.b32.xlu1 %v232_v18, %s816_s17 }
 0x14d   :  { %v238_v20 = vpop.permute.xlu0 %237 }
 0x14e   :  { %240 = vst.msk [vmem:[#allocation2 + $0x1] sm:$0x1] %vm186_vm2, %v238_v20 }
 0x14f   :  { %242 = vst.msk [vmem:[#allocation2 + $0x1] sm:$0x1] %vm201_vm3, %v197_v9  ;;  %v250_v21 = vpop.permute.xlu1 %249 }
 0x150   :  { %252 = vst.msk [vmem:[#allocation2 + $0x5] sm:$0x1] %vm186_vm2, %v250_v21 }
 0x151   :  { %254 = vst.msk [vmem:[#allocation2 + $0x5] sm:$0x1] %vm201_vm3, %v223_v17  ;;  %v244_v22 = vpop.permute.xlu0 %243 }
 0x152   :  { %246 = vst.msk [vmem:[#allocation2 + $0x3] sm:$0x1] %vm186_vm2, %v244_v22 }
 0x153   :  { %248 = vst.msk [vmem:[#allocation2 + $0x3] sm:$0x1] %vm201_vm3, %v207_v13  ;;  %v256_v23 = vpop.permute.xlu1 %255 }
 0x154   :  { %258 = vst.msk [vmem:[#allocation2 + $0x7] sm:$0x1] %vm186_vm2, %v256_v23 }
 0x155   :  { %260 = vst.msk [vmem:[#allocation2 + $0x7] sm:$0x1] %vm201_vm3, %v232_v18  ;;  %v199_v24 = vpop.permute.xlu0 %198 }
 0x156   :  { %202 = vst.msk [vmem:[#allocation2] sm:$0x1] %vm201_vm3, %v199_v24 }
 0x157   :  { %v209_v25 = vpop.permute.xlu1 %208 }
 0x158   :  { %211 = vst.msk [vmem:[#allocation2 + $0x2] sm:$0x1] %vm201_vm3, %v209_v25 }
 0x159   :  { %v225_v26 = vpop.permute.xlu0 %224 }
 0x15a   :  { %227 = vst.msk [vmem:[#allocation2 + $0x4] sm:$0x1] %vm201_vm3, %v225_v26 }
 0x15b   :  { %v234_v27 = vpop.permute.xlu1 %233 }
 0x15c   :  { %236 = vst.msk [vmem:[#allocation2 + $0x6] sm:$0x1] %vm201_vm3, %v234_v27 }
 0x163   :  { %v261_v28 = vld [vmem:[#allocation2] sm:$0xff] }
 0x164   :  { %v270_v29 = vrot.slane %v261_v28, %v912_v47  ;;  %v263_v30 = vcombine.high %v261_v28, %v261_v28 }
 0x166   :  { %v278_v31 = vcombine.high %v270_v29, %v270_v29  ;;  %v277_v32 = vrot.slane %v263_v30, %v912_v47  ;;  %v284_v35 = vpack.c.bf16 %v270_v29, %v270_v29 }
 0x168   :  { %v285_v33 = vpack.c.bf16 %v278_v31, %v278_v31  ;;  %v279_v34 = vcombine.high %v277_v32, %v277_v32  ;;  %v286_v37 = vpack.c.bf16 %v277_v32, %v277_v32 }
 0x16a   :  { %583 = vmatprep.mubr.bf16.mxu0 %v285_v33  ;;  %v287_v36 = vpack.c.bf16 %v279_v34, %v279_v34 }
 0x16b   :  { %584 = vmatmul.mubr.bf16.vlgmr.msra.gmra.mxu0 %v284_v35 }
 0x16c   :  { %623 = vmatprep.mubr.bf16.mxu1 %v287_v36 }
 0x16d   :  { %624 = vmatmul.mubr.bf16.vlgmr.msra.gmra.mxu1 %v286_v37 }
 0x22b   :  { %v711_v38 = vpop.f32.mrf.mxu0 }
 0x22d   :  { %v712_v40 = vpop.f32.mrf.mxu0  ;;  %v733_v41 = vpop.f32.mrf.mxu1 }
 0x22e   :  { %v713_v42 = vadd.f32 %v712_v40, %v711_v38 }
 0x22f   :  { %v714_v43 = vpop.f32.mrf.mxu0  ;;  %v734_v44 = vpop.f32.mrf.mxu1 }
 0x230   :  { %v586_v45 = vadd.f32 %v713_v42, %v662_v39  ;;  %v735_v46 = vadd.f32 %v734_v44, %v733_v41 }
 0x231   :  { %v715_v47 = vpop.f32.mrf.mxu0  ;;  %v736_v48 = vpop.f32.mrf.mxu1 }
 0x232   :  { %v626_v49 = vadd.f32 %v735_v46, %v586_v45 }
 0x233   :  { %v737_v50 = vpop.f32.mrf.mxu1 }
 0x234   :  { %631 = vst [vmem:[#allocation3] sm:$0x3] %v626_v49 }
 0x235   :  { %803 = shalt.err (!%p800_p4)
}
 0x236   :  { %641 = dma.vmem_to_hbm [thread:$0]  %s639_s20, 32, %s1012_s4, [#allocation4]  }
 0x237   :  { %812 = dma.done.wait [#allocation4], 32  }
 0x238   :  { %813 = vsyncadd [#allocation4], 4294967264 }
 0x239   :  { %645 = vsyncpa [#allocation4], 1 }

</bundles_post_ra>
